<compile_context>
chip_gen: v5e
topology: v5e:2x2
jax: 0.10.0
libtpu: 0.0.40
codegen_flags: <defaults>
</compile_context>

<pallas_src>
import math

import jax
import jax.numpy as jnp
from jax import lax
from jax.experimental import pallas as pl
from jax.experimental.pallas import tpu as pltpu


def _mod_residual_kernel(x_top_ref, x_ref, x_bot_ref,
                         y_top_ref, y_ref, y_bot_ref,
                         w1_ref, b1_ref, w2_ref, b2_ref,
                         out_ref, t_ref):
    """One (batch, row-tile) block of out = x + conv3x3(x + conv1x1(y)).

    The lane axis is the fused (R rows, W, C); "rows" below are super-rows of
    R image rows (F = R*W*C, Fy = R*W*Cy, TH = super-row tile).

      x_ref      [1, TH, F]     body super-rows of x
      x_top/bot  [1, 1, 1, F]   super-row above / below the tile (border-clamped)
      y_*        same, Fy lanes
      w1_ref     [Fy, F]        block-diagonal 1x1-conv weight   (matmul dtype)
      b1_ref     [1, F]         f32
      w2_ref     [3, F, F]      block-Toeplitz 3x3 super-taps    (matmul dtype)
      b2_ref     [1, F]         f32
      out_ref    [1, TH, F]
      t_ref      [TH+2, F]      VMEM scratch: t = x + project(y) incl. halos
    """
    i = pl.program_id(1)
    n_row_tiles = pl.num_programs(1)
    th = x_ref.shape[1]
    f = t_ref.shape[1]
    mm_dtype = w1_ref.dtype            # bf16 (MXU-native) or f32
    b1 = b1_ref[...]

    # ---- t = x + project(y), written straight into the (TH+2)-row window.
    # Body: one fat [TH, Fy] @ [Fy, F] dot. Halos: two tiny M=1 dots (no
    # y-window scratch round-trip -> fewer VMEM stores; accumulation is f32).
    t_ref[1:th + 1, :] = (
        x_ref[0].astype(jnp.float32)
        + jnp.dot(y_ref[0].astype(mm_dtype), w1_ref[...],
                  preferred_element_type=jnp.float32)
        + b1)
    t_ref[0:1, :] = (
        x_top_ref[0, 0].astype(jnp.float32)
        + jnp.dot(y_top_ref[0, 0].astype(mm_dtype), w1_ref[...],
                  preferred_element_type=jnp.float32)
        + b1)
    t_ref[th + 1:th + 2, :] = (
        x_bot_ref[0, 0].astype(jnp.float32)
        + jnp.dot(y_bot_ref[0, 0].astype(mm_dtype), w1_ref[...],
                  preferred_element_type=jnp.float32)
        + b1)

    # ---- the 3x3 conv zero-pads vertically: zero halo rows at the true border.
    @pl.when(i == 0)
    def _():
        t_ref[0:1, :] = jnp.zeros((1, f), jnp.float32)

    @pl.when(i == n_row_tiles - 1)
    def _():
        t_ref[th + 1:th + 2, :] = jnp.zeros((1, f), jnp.float32)

    # ---- residue(t): three fat block-Toeplitz matmuls (one per vertical
    # super-tap), f32 accumulation on the MXU.
    res = jnp.dot(t_ref[0:th, :].astype(mm_dtype), w2_ref[0],
                  preferred_element_type=jnp.float32)
    res = res + jnp.dot(t_ref[1:th + 1, :].astype(mm_dtype), w2_ref[1],
                        preferred_element_type=jnp.float32)
    res = res + jnp.dot(t_ref[2:th + 2, :].astype(mm_dtype), w2_ref[2],
                        preferred_element_type=jnp.float32)
    res = res + b2_ref[...]

    # ---- out = x + residue(x + project(y))
    out_ref[0] = (x_ref[0].astype(jnp.float32) + res).astype(out_ref.dtype)


def _largest_divisor_leq(n, cap):
    cap = max(1, min(cap, n))
    for d in range(cap, 0, -1):
        if n % d == 0:
            return d
    return 1


def choose_rows_per_group(H, W, C, *, target_lanes=128, max_rows=8):
    """Smallest R such that R*W*C is a multiple of the 128-lane vreg width."""
    F = W * C
    if F % target_lanes == 0:
        return 1
    R = target_lanes // math.gcd(F, target_lanes)
    if R <= max_rows and H % R == 0:
        return R
    return 1


def prepare_mod_residual_params(proj_w, proj_b, res_w, res_b, *, width,
                                rows_per_group=1, matmul_dtype=jnp.float32):
    """Precompute (once per layer) the fused lane-space weights.

    proj_w [C, Cy, 1, 1], proj_b [C], res_w [C, C, 3, 3], res_b [C] (PyTorch OIHW).
    Lane ordering is (r, w, c) with r = row-within-group (0..R-1).
    """
    C, Cy = proj_w.shape[0], proj_w.shape[1]
    W, R = width, rows_per_group
    FB = W * C                      # one image row worth of lanes
    F, Fy = R * FB, R * W * Cy

    # 1x1 conv as a block-diagonal matmul over the fused (r, w, cy) -> (r, w, c) lanes.
    w1 = jnp.transpose(proj_w[:, :, 0, 0], (1, 0))             # [Cy, C]
    w1f = jnp.kron(jnp.eye(R * W, dtype=w1.dtype), w1)          # [Fy, F]
    b1f = jnp.tile(proj_b, R * W).reshape(1, F).astype(jnp.float32)

    # Horizontal block-Toeplitz per vertical tap kh:
    #   w2h[kh, a*C + ci, w*C + co] = res_w[co, ci, kh, a - w + 1]  (else 0)
    # Out-of-range horizontal taps are absent -> W-edge zero padding is baked in.
    taps = jnp.transpose(res_w, (2, 3, 1, 0))                    # [kh, kw, Cin, Cout]
    a_col = jnp.arange(W).reshape(1, W, 1)
    w_col = jnp.arange(W).reshape(1, 1, W)
    kw_off = jnp.arange(3).reshape(3, 1, 1)
    sel = (a_col == w_col + kw_off - 1).astype(res_w.dtype)      # [kw, a, w]
    w2h = jnp.einsum('kaw,hkio->haiwo', sel, taps).reshape(3, FB, FB)

    # Vertical "super-taps" over R fused rows: input super-row s+(S-1), block
    # (rin -> rout) carries the original tap kh = (S-1)*R + rin - rout + 1.
    # For R=1 this reduces exactly to w2f[S] = w2h[S].
    w2f = jnp.zeros((3, F, F), res_w.dtype)
    for S in range(3):
        for rin in range(R):
            for rout in range(R):
                kh = (S - 1) * R + rin - rout + 1
                if 0 <= kh < 3:
                    w2f = w2f.at[S,
                                 rin * FB:(rin + 1) * FB,
                                 rout * FB:(rout + 1) * FB].set(w2h[kh])
    b2f = jnp.tile(res_b, R * W).reshape(1, F).astype(jnp.float32)

    return {
        "w1": w1f.astype(matmul_dtype),
        "b1": b1f,
        "w2": w2f.astype(matmul_dtype),
        "b2": b2f,
        "rows_per_group": R,
        "width": W,
        "channels": C,
        "channels_y": Cy,
    }


def mod_residual_block_nhwc(x, y, params, *, row_tile=256,
                            single_buffer_weights=False,
                            vmem_limit_bytes=32 * 1024 * 1024):
    """Production entry point: channels-last [B, H, W, C] in / out (no transposes).

    `params` comes from prepare_mod_residual_params (precomputed once per layer).
    `row_tile` is in image rows (default 256 -> large MXU M dim).
    """
    B, H, W, C = x.shape
    Cy = y.shape[3]
    R = params["rows_per_group"]
    if W != params["width"] or C != params["channels"] or Cy != params["channels_y"]:
        raise ValueError("params were prepared for a different shape")
    if H % R != 0:
        raise ValueError(f"H={H} must be divisible by rows_per_group={R}")

    Hs = H // R                      # super-rows
    F, Fy = R * W * C, R * W * Cy

    # Layout-preserving views: fuse (R rows, W, C) into the lane axis.
    x3 = x.reshape(B, Hs, F)
    y3 = y.reshape(B, Hs, Fy)
    x4 = x3.reshape(B, Hs, 1, F)     # single-halo-super-row view
    y4 = y3.reshape(B, Hs, 1, Fy)

    # Largest tile (in super-rows) dividing Hs, capped by row_tile image rows.
    th = _largest_divisor_leq(Hs, max(1, row_tile // R))
    # TODO(synk): add a remainder-tile path (masked tail rows) for awkward H
    # where the largest divisor is small; not needed for these shapes.
    grid = (B, Hs // th)

    body3 = lambda b, i: (b, i, 0)
    top4 = lambda b, i: (b, jnp.maximum(i * th - 1, 0), 0, 0)
    bot4 = lambda b, i: (b, jnp.minimum((i + 1) * th, Hs - 1), 0, 0)
    rep2 = lambda b, i: (0, 0)
    rep3 = lambda b, i: (0, 0, 0)

    # Constant-index weight operands: optionally single-buffer them so large-F
    # deployments don't double-buffer an O(F^2) w2 inside v7x's 64 MiB VMEM.
    if single_buffer_weights:
        wspec = lambda shape, imap: pl.BlockSpec(shape, imap,
                                                 pipeline_mode=pl.Buffered(1))
    else:
        wspec = pl.BlockSpec

    out3 = pl.pallas_call(
        _mod_residual_kernel,
        out_shape=jax.ShapeDtypeStruct((B, Hs, F), x.dtype),
        grid=grid,
        in_specs=[
            pl.BlockSpec((1, 1, 1, F), top4),     # x: super-row above the tile
            pl.BlockSpec((1, th, F), body3),      # x: tile body
            pl.BlockSpec((1, 1, 1, F), bot4),     # x: super-row below
            pl.BlockSpec((1, 1, 1, Fy), top4),    # y: super-row above
            pl.BlockSpec((1, th, Fy), body3),     # y: tile body
            pl.BlockSpec((1, 1, 1, Fy), bot4),    # y: super-row below
            wspec((Fy, F), rep2),                 # w1 (block-diagonal 1x1)
            wspec((1, F), rep2),                  # b1
            wspec((3, F, F), rep3),               # w2 (block-Toeplitz 3x3)
            wspec((1, F), rep2),                  # b2
        ],
        out_specs=pl.BlockSpec((1, th, F), body3),
        scratch_shapes=[pltpu.VMEM((th + 2, F), jnp.float32)],
        compiler_params=pltpu.CompilerParams(
            # Both grid axes independent -> megacore-shardable on v7x (B stays
            # outermost so there are >= 2 steps even when one tile covers H).
            dimension_semantics=("parallel", "parallel"),
            vmem_limit_bytes=vmem_limit_bytes,
        ),
        # NOTE: no input_output_aliases (x -> out): halo super-rows of x are
        # re-read by neighboring row-tiles, so in-place writes would race.
    )(x4, x3, x4, y4, y3, y4,
      params["w1"], params["b1"], params["w2"], params["b2"])

    return out3.reshape(B, H, W, C)


def mod_residual_block_nchw(x_nchw, y_nchw, params, **kwargs):
    """PyTorch-parity wrapper (NCHW in / out). The transposes materialize HBM
    copies; production callers should use mod_residual_block_nhwc directly."""
    x = jnp.transpose(x_nchw, (0, 2, 3, 1))
    y = jnp.transpose(y_nchw, (0, 2, 3, 1))
    out = mod_residual_block_nhwc(x, y, params, **kwargs)
    return jnp.transpose(out, (0, 3, 1, 2))


def _reference(x, y, proj_w, proj_b, res_w, res_b):
    """Pure-JAX NCHW reference matching the PyTorch module."""
    dn = ('NCHW', 'OIHW', 'NCHW')
    proj = lax.conv_general_dilated(y, proj_w, (1, 1), 'VALID',
                                    dimension_numbers=dn)
    proj = proj + proj_b[None, :, None, None]
    t = x + proj
    res = lax.conv_general_dilated(t, res_w, (1, 1), ((1, 1), (1, 1)),
                                   dimension_numbers=dn)
    res = res + res_b[None, :, None, None]
    return x + res


if __name__ == "__main__":
    B, C, Cy, H, W = 2, 4, 8, 16, 16

    key = jax.random.PRNGKey(0)
    kx, ky, kpw, kpb, krw, krb = jax.random.split(key, 6)

    x = jax.random.normal(kx, (B, C, H, W), dtype=jnp.float32)
    y = jax.random.normal(ky, (B, Cy, H, W), dtype=jnp.float32)

    # Deterministic synthetic parameters (PyTorch Conv2d shapes).
    proj_w = 0.1 * jax.random.normal(kpw, (C, Cy, 1, 1), dtype=jnp.float32)
    proj_b = 0.1 * jax.random.normal(kpb, (C,), dtype=jnp.float32)
    res_w = 0.1 * jax.random.normal(krw, (C, C, 3, 3), dtype=jnp.float32)
    res_b = 0.1 * jax.random.normal(krb, (C,), dtype=jnp.float32)

    ref = _reference(x, y, proj_w, proj_b, res_w, res_b)

    # W*C = 64 < 128 lanes -> fuse R=2 rows into the lane axis for dense stores.
    R = choose_rows_per_group(H, W, C)

    # 1) Exact f32-MXU path: matches the conv reference at tight tolerance.
    params_f32 = prepare_mod_residual_params(
        proj_w, proj_b, res_w, res_b, width=W, rows_per_group=R,
        matmul_dtype=jnp.float32)
    out_f32 = jax.block_until_ready(mod_residual_block_nchw(x, y, params_f32))
    assert out_f32.shape == (B, C, H, W)
    err = float(jnp.max(jnp.abs(out_f32 - ref)))
    assert jnp.allclose(out_f32, ref, atol=1e-3, rtol=1e-3), \
        f"f32 path max abs err = {err}"

    # 2) bf16-MXU-operand path (f32 accumulation), per the perf review; bf16
    #    rounding warrants a looser tolerance (validate per use-case).
    params_bf16 = prepare_mod_residual_params(
        proj_w, proj_b, res_w, res_b, width=W, rows_per_group=R,
        matmul_dtype=jnp.bfloat16)
    out_bf16 = jax.block_until_ready(mod_residual_block_nchw(x, y, params_bf16))
    err_bf = float(jnp.max(jnp.abs(out_bf16 - ref)))
    assert jnp.allclose(out_bf16, ref, atol=5e-2, rtol=5e-2), \
        f"bf16 path max abs err = {err_bf}"

    print("KERNEL_OK")
</pallas_src>

<mosaic_0001>
module attributes {stable_mosaic.version = 11 : i64} {
  func.func @_mod_residual_kernel(%arg0: i32, %arg1: i32, %arg2: memref<1x1x1x128xf32, #tpu.memory_space<vmem>>, %arg3: memref<1x8x128xf32, #tpu.memory_space<vmem>>, %arg4: memref<1x1x1x128xf32, #tpu.memory_space<vmem>>, %arg5: memref<1x1x1x256xf32, #tpu.memory_space<vmem>>, %arg6: memref<1x8x256xf32, #tpu.memory_space<vmem>>, %arg7: memref<1x1x1x256xf32, #tpu.memory_space<vmem>>, %arg8: memref<256x128xf32, #tpu.memory_space<vmem>>, %arg9: memref<1x128xf32, #tpu.memory_space<vmem>>, %arg10: memref<3x128x128xf32, #tpu.memory_space<vmem>>, %arg11: memref<1x128xf32, #tpu.memory_space<vmem>>, %arg12: memref<1x8x128xf32, #tpu.memory_space<vmem>>, %arg13: memref<10x128xf32, #tpu.memory_space<vmem>>) attributes {dimension_semantics = [#tpu.dimension_semantics<parallel>, #tpu.dimension_semantics<parallel>], iteration_bounds = array<i64: 2, 1>, scalar_prefetch = 0 : i64, scratch_operands = 1 : i64, tpu.core_type = #tpu.core_type<tc>, window_params = [{transform_indices = @transform_0, window_bounds = array<i64: 1, 1, 1, 128>}, {transform_indices = @transform_1, window_bounds = array<i64: 1, 8, 128>}, {transform_indices = @transform_2, window_bounds = array<i64: 1, 1, 1, 128>}, {transform_indices = @transform_3, window_bounds = array<i64: 1, 1, 1, 256>}, {transform_indices = @transform_4, window_bounds = array<i64: 1, 8, 256>}, {transform_indices = @transform_5, window_bounds = array<i64: 1, 1, 1, 256>}, {pipeline_mode = #tpu.pipeline_mode<synchronous>, transform_indices = @transform_6, window_bounds = array<i64: 256, 128>}, {pipeline_mode = #tpu.pipeline_mode<synchronous>, transform_indices = @transform_7, window_bounds = array<i64: 1, 128>}, {pipeline_mode = #tpu.pipeline_mode<synchronous>, transform_indices = @transform_8, window_bounds = array<i64: 3, 128, 128>}, {pipeline_mode = #tpu.pipeline_mode<synchronous>, transform_indices = @transform_9, window_bounds = array<i64: 1, 128>}, {transform_indices = @transform_10, window_bounds = array<i64: 1, 8, 128>}]} {
    %c0 = arith.constant 0 : index
    %c0_0 = arith.constant 0 : index
    %0 = vector.load %arg9[%c0, %c0_0] : memref<1x128xf32, #tpu.memory_space<vmem>>, vector<1x128xf32>
    %c0_1 = arith.constant 0 : index
    %c0_2 = arith.constant 0 : index
    %c0_3 = arith.constant 0 : index
    %1 = vector.load %arg3[%c0_1, %c0_2, %c0_3] : memref<1x8x128xf32, #tpu.memory_space<vmem>>, vector<1x8x128xf32>
    %2 = vector.shape_cast %1 : vector<1x8x128xf32> to vector<8x128xf32>
    %c0_4 = arith.constant 0 : index
    %c0_5 = arith.constant 0 : index
    %c0_6 = arith.constant 0 : index
    %3 = vector.load %arg6[%c0_4, %c0_5, %c0_6] : memref<1x8x256xf32, #tpu.memory_space<vmem>>, vector<1x8x256xf32>
    %4 = vector.shape_cast %3 : vector<1x8x256xf32> to vector<8x256xf32>
    %c0_7 = arith.constant 0 : index
    %c0_8 = arith.constant 0 : index
    %5 = vector.load %arg8[%c0_7, %c0_8] : memref<256x128xf32, #tpu.memory_space<vmem>>, vector<256x128xf32>
    %cst = arith.constant dense<0.000000e+00> : vector<8x128xf32>
    %6 = tpu.matmul %4, %5, %cst {dimension_numbers = #tpu.dot_dimension_numbers<[1], [0], [0], [1], [0, 0, 1, 1], [], []>} : vector<8x256xf32>, vector<256x128xf32>, vector<8x128xf32> -> vector<8x128xf32>
    %7 = arith.addf %2, %6 : vector<8x128xf32>
    %8 = vector.broadcast %0 : vector<1x128xf32> to vector<8x128xf32>
    %9 = arith.addf %7, %8 : vector<8x128xf32>
    %c1 = arith.constant 1 : index
    %c0_9 = arith.constant 0 : index
    %10 = vector.load %arg13[%c1, %c0_9] : memref<10x128xf32, #tpu.memory_space<vmem>>, vector<8x128xf32>
    tpu.vector_store %arg13[%c1, %c0_9], %9 {strides = array<i32>} : memref<10x128xf32, #tpu.memory_space<vmem>>, vector<8x128xf32>,
    %c0_10 = arith.constant 0 : index
    %c0_11 = arith.constant 0 : index
    %c0_12 = arith.constant 0 : index
    %c0_13 = arith.constant 0 : index
    %11 = vector.load %arg2[%c0_10, %c0_11, %c0_12, %c0_13] : memref<1x1x1x128xf32, #tpu.memory_space<vmem>>, vector<1x1x1x128xf32>
    %12 = vector.shape_cast %11 : vector<1x1x1x128xf32> to vector<1x128xf32>
    %c0_14 = arith.constant 0 : index
    %c0_15 = arith.constant 0 : index
    %c0_16 = arith.constant 0 : index
    %c0_17 = arith.constant 0 : index
    %13 = vector.load %arg5[%c0_14, %c0_15, %c0_16, %c0_17] : memref<1x1x1x256xf32, #tpu.memory_space<vmem>>, vector<1x1x1x256xf32>
    %14 = vector.shape_cast %13 : vector<1x1x1x256xf32> to vector<1x256xf32>
    %c0_18 = arith.constant 0 : index
    %c0_19 = arith.constant 0 : index
    %15 = vector.load %arg8[%c0_18, %c0_19] : memref<256x128xf32, #tpu.memory_space<vmem>>, vector<256x128xf32>
    %cst_20 = arith.constant dense<0.000000e+00> : vector<1x128xf32>
    %16 = tpu.matmul %14, %15, %cst_20 {dimension_numbers = #tpu.dot_dimension_numbers<[1], [0], [0], [1], [0, 0, 1, 1], [], []>} : vector<1x256xf32>, vector<256x128xf32>, vector<1x128xf32> -> vector<1x128xf32>
    %17 = arith.addf %12, %16 : vector<1x128xf32>
    %18 = arith.addf %17, %0 : vector<1x128xf32>
    %c0_21 = arith.constant 0 : index
    %c0_22 = arith.constant 0 : index
    %19 = vector.load %arg13[%c0_21, %c0_22] : memref<10x128xf32, #tpu.memory_space<vmem>>, vector<1x128xf32>
    tpu.vector_store %arg13[%c0_21, %c0_22], %18 {strides = array<i32>} : memref<10x128xf32, #tpu.memory_space<vmem>>, vector<1x128xf32>,
    %c0_23 = arith.constant 0 : index
    %c0_24 = arith.constant 0 : index
    %c0_25 = arith.constant 0 : index
    %c0_26 = arith.constant 0 : index
    %20 = vector.load %arg4[%c0_23, %c0_24, %c0_25, %c0_26] : memref<1x1x1x128xf32, #tpu.memory_space<vmem>>, vector<1x1x1x128xf32>
    %21 = vector.shape_cast %20 : vector<1x1x1x128xf32> to vector<1x128xf32>
    %c0_27 = arith.constant 0 : index
    %c0_28 = arith.constant 0 : index
    %c0_29 = arith.constant 0 : index
    %c0_30 = arith.constant 0 : index
    %22 = vector.load %arg7[%c0_27, %c0_28, %c0_29, %c0_30] : memref<1x1x1x256xf32, #tpu.memory_space<vmem>>, vector<1x1x1x256xf32>
    %23 = vector.shape_cast %22 : vector<1x1x1x256xf32> to vector<1x256xf32>
    %c0_31 = arith.constant 0 : index
    %c0_32 = arith.constant 0 : index
    %24 = vector.load %arg8[%c0_31, %c0_32] : memref<256x128xf32, #tpu.memory_space<vmem>>, vector<256x128xf32>
    %cst_33 = arith.constant dense<0.000000e+00> : vector<1x128xf32>
    %25 = tpu.matmul %23, %24, %cst_33 {dimension_numbers = #tpu.dot_dimension_numbers<[1], [0], [0], [1], [0, 0, 1, 1], [], []>} : vector<1x256xf32>, vector<256x128xf32>, vector<1x128xf32> -> vector<1x128xf32>
    %26 = arith.addf %21, %25 : vector<1x128xf32>
    %27 = arith.addf %26, %0 : vector<1x128xf32>
    %c9 = arith.constant 9 : index
    %c0_34 = arith.constant 0 : index
    %28 = vector.load %arg13[%c9, %c0_34] : memref<10x128xf32, #tpu.memory_space<vmem>>, vector<1x128xf32>
    tpu.vector_store %arg13[%c9, %c0_34], %27 {strides = array<i32>} : memref<10x128xf32, #tpu.memory_space<vmem>>, vector<1x128xf32>,
    %c0_i32 = arith.constant 0 : i32
    %29 = arith.cmpi eq, %arg1, %c0_i32 : i32
    %30 = arith.extui %29 : i1 to i32
    %c0_i32_35 = arith.constant 0 : i32
    %31 = arith.cmpi ne, %30, %c0_i32_35 : i32
    scf.if %31 {
      %cst_63 = arith.constant 0.000000e+00 : f32
      %58 = vector.broadcast %cst_63 : f32 to vector<1x128xf32>
      %c0_64 = arith.constant 0 : index
      %c0_65 = arith.constant 0 : index
      %59 = vector.load %arg13[%c0_64, %c0_65] : memref<10x128xf32, #tpu.memory_space<vmem>>, vector<1x128xf32>
      tpu.vector_store %arg13[%c0_64, %c0_65], %58 {strides = array<i32>} : memref<10x128xf32, #tpu.memory_space<vmem>>, vector<1x128xf32>,
    } else {
    }
    %c0_i32_36 = arith.constant 0 : i32
    %32 = arith.cmpi eq, %arg1, %c0_i32_36 : i32
    %33 = arith.extui %32 : i1 to i32
    %c0_i32_37 = arith.constant 0 : i32
    %34 = arith.cmpi ne, %33, %c0_i32_37 : i32
    scf.if %34 {
      %cst_63 = arith.constant 0.000000e+00 : f32
      %58 = vector.broadcast %cst_63 : f32 to vector<1x128xf32>
      %c9_64 = arith.constant 9 : index
      %c0_65 = arith.constant 0 : index
      %59 = vector.load %arg13[%c9_64, %c0_65] : memref<10x128xf32, #tpu.memory_space<vmem>>, vector<1x128xf32>
      tpu.vector_store %arg13[%c9_64, %c0_65], %58 {strides = array<i32>} : memref<10x128xf32, #tpu.memory_space<vmem>>, vector<1x128xf32>,
    } else {
    }
    %c0_38 = arith.constant 0 : index
    %c0_39 = arith.constant 0 : index
    %35 = vector.load %arg13[%c0_38, %c0_39] : memref<10x128xf32, #tpu.memory_space<vmem>>, vector<8x128xf32>
    %c0_40 = arith.constant 0 : index
    %c0_41 = arith.constant 0 : index
    %c0_42 = arith.constant 0 : index
    %36 = vector.load %arg10[%c0_40, %c0_41, %c0_42] : memref<3x128x128xf32, #tpu.memory_space<vmem>>, vector<1x128x128xf32>
    %37 = vector.shape_cast %36 : vector<1x128x128xf32> to vector<128x128xf32>
    %cst_43 = arith.constant dense<0.000000e+00> : vector<8x128xf32>
    %38 = tpu.matmul %35, %37, %cst_43 {dimension_numbers = #tpu.dot_dimension_numbers<[1], [0], [0], [1], [0, 0, 1, 1], [], []>} : vector<8x128xf32>, vector<128x128xf32>, vector<8x128xf32> -> vector<8x128xf32>
    %c1_44 = arith.constant 1 : index
    %c0_45 = arith.constant 0 : index
    %39 = vector.load %arg13[%c1_44, %c0_45] : memref<10x128xf32, #tpu.memory_space<vmem>>, vector<8x128xf32>
    %c1_46 = arith.constant 1 : index
    %c0_47 = arith.constant 0 : index
    %c0_48 = arith.constant 0 : index
    %40 = vector.load %arg10[%c1_46, %c0_47, %c0_48] : memref<3x128x128xf32, #tpu.memory_space<vmem>>, vector<1x128x128xf32>
    %41 = vector.shape_cast %40 : vector<1x128x128xf32> to vector<128x128xf32>
    %cst_49 = arith.constant dense<0.000000e+00> : vector<8x128xf32>
    %42 = tpu.matmul %39, %41, %cst_49 {dimension_numbers = #tpu.dot_dimension_numbers<[1], [0], [0], [1], [0, 0, 1, 1], [], []>} : vector<8x128xf32>, vector<128x128xf32>, vector<8x128xf32> -> vector<8x128xf32>
    %43 = arith.addf %38, %42 : vector<8x128xf32>
    %c2 = arith.constant 2 : index
    %c0_50 = arith.constant 0 : index
    %44 = vector.load %arg13[%c2, %c0_50] : memref<10x128xf32, #tpu.memory_space<vmem>>, vector<8x128xf32>
    %c2_51 = arith.constant 2 : index
    %c0_52 = arith.constant 0 : index
    %c0_53 = arith.constant 0 : index
    %45 = vector.load %arg10[%c2_51, %c0_52, %c0_53] : memref<3x128x128xf32, #tpu.memory_space<vmem>>, vector<1x128x128xf32>
    %46 = vector.shape_cast %45 : vector<1x128x128xf32> to vector<128x128xf32>
    %cst_54 = arith.constant dense<0.000000e+00> : vector<8x128xf32>
    %47 = tpu.matmul %44, %46, %cst_54 {dimension_numbers = #tpu.dot_dimension_numbers<[1], [0], [0], [1], [0, 0, 1, 1], [], []>} : vector<8x128xf32>, vector<128x128xf32>, vector<8x128xf32> -> vector<8x128xf32>
    %48 = arith.addf %43, %47 : vector<8x128xf32>
    %c0_55 = arith.constant 0 : index
    %c0_56 = arith.constant 0 : index
    %49 = vector.load %arg11[%c0_55, %c0_56] : memref<1x128xf32, #tpu.memory_space<vmem>>, vector<1x128xf32>
    %50 = vector.broadcast %49 : vector<1x128xf32> to vector<8x128xf32>
    %51 = arith.addf %48, %50 : vector<8x128xf32>
    %c0_57 = arith.constant 0 : index
    %c0_58 = arith.constant 0 : index
    %c0_59 = arith.constant 0 : index
    %52 = vector.load %arg3[%c0_57, %c0_58, %c0_59] : memref<1x8x128xf32, #tpu.memory_space<vmem>>, vector<1x8x128xf32>
    %53 = vector.shape_cast %52 : vector<1x8x128xf32> to vector<8x128xf32>
    %54 = arith.addf %53, %51 : vector<8x128xf32>
    %c0_60 = arith.constant 0 : index
    %c0_61 = arith.constant 0 : index
    %c0_62 = arith.constant 0 : index
    %55 = vector.load %arg12[%c0_60, %c0_61, %c0_62] : memref<1x8x128xf32, #tpu.memory_space<vmem>>, vector<1x8x128xf32>
    %56 = vector.shape_cast %55 : vector<1x8x128xf32> to vector<8x128xf32>
    %57 = vector.shape_cast %54 : vector<8x128xf32> to vector<1x8x128xf32>
    tpu.vector_store %arg12[%c0_60, %c0_61, %c0_62], %57 {strides = array<i32>} : memref<1x8x128xf32, #tpu.memory_space<vmem>>, vector<1x8x128xf32>,
    return
  }
  func.func @transform_0(%arg0: i32, %arg1: i32) -> (i32, i32, i32, i32) {
    %c8_i32 = arith.constant 8 : i32
    %0 = arith.muli %arg1, %c8_i32 : i32
    %c1_i32 = arith.constant 1 : i32
    %1 = arith.subi %0, %c1_i32 : i32
    %c0_i32 = arith.constant 0 : i32
    %2 = arith.maxsi %1, %c0_i32 : i32
    %c0_i32_0 = arith.constant 0 : i32
    %c0_i32_1 = arith.constant 0 : i32
    %c0_i32_2 = arith.constant 0 : i32
    return %arg0, %2, %c0_i32_0, %c0_i32_1 : i32, i32, i32, i32
  }
  func.func @transform_1(%arg0: i32, %arg1: i32) -> (i32, i32, i32) {
    %c0_i32 = arith.constant 0 : i32
    %c0_i32_0 = arith.constant 0 : i32
    return %arg0, %arg1, %c0_i32 : i32, i32, i32
  }
  func.func @transform_2(%arg0: i32, %arg1: i32) -> (i32, i32, i32, i32) {
    %c1_i32 = arith.constant 1 : i32
    %0 = arith.addi %arg1, %c1_i32 : i32
    %c8_i32 = arith.constant 8 : i32
    %1 = arith.muli %0, %c8_i32 : i32
    %c7_i32 = arith.constant 7 : i32
    %2 = arith.minsi %1, %c7_i32 : i32
    %c0_i32 = arith.constant 0 : i32
    %c0_i32_0 = arith.constant 0 : i32
    %c0_i32_1 = arith.constant 0 : i32
    return %arg0, %2, %c0_i32, %c0_i32_0 : i32, i32, i32, i32
  }
  func.func @transform_3(%arg0: i32, %arg1: i32) -> (i32, i32, i32, i32) {
    %c8_i32 = arith.constant 8 : i32
    %0 = arith.muli %arg1, %c8_i32 : i32
    %c1_i32 = arith.constant 1 : i32
    %1 = arith.subi %0, %c1_i32 : i32
    %c0_i32 = arith.constant 0 : i32
    %2 = arith.maxsi %1, %c0_i32 : i32
    %c0_i32_0 = arith.constant 0 : i32
    %c0_i32_1 = arith.constant 0 : i32
    %c0_i32_2 = arith.constant 0 : i32
    return %arg0, %2, %c0_i32_0, %c0_i32_1 : i32, i32, i32, i32
  }
  func.func @transform_4(%arg0: i32, %arg1: i32) -> (i32, i32, i32) {
    %c0_i32 = arith.constant 0 : i32
    %c0_i32_0 = arith.constant 0 : i32
    return %arg0, %arg1, %c0_i32 : i32, i32, i32
  }
  func.func @transform_5(%arg0: i32, %arg1: i32) -> (i32, i32, i32, i32) {
    %c1_i32 = arith.constant 1 : i32
    %0 = arith.addi %arg1, %c1_i32 : i32
    %c8_i32 = arith.constant 8 : i32
    %1 = arith.muli %0, %c8_i32 : i32
    %c7_i32 = arith.constant 7 : i32
    %2 = arith.minsi %1, %c7_i32 : i32
    %c0_i32 = arith.constant 0 : i32
    %c0_i32_0 = arith.constant 0 : i32
    %c0_i32_1 = arith.constant 0 : i32
    return %arg0, %2, %c0_i32, %c0_i32_0 : i32, i32, i32, i32
  }
  func.func @transform_6(%arg0: i32, %arg1: i32) -> (i32, i32) {
    %c0_i32 = arith.constant 0 : i32
    %c0_i32_0 = arith.constant 0 : i32
    %c0_i32_1 = arith.constant 0 : i32
    return %c0_i32, %c0_i32_0 : i32, i32
  }
  func.func @transform_7(%arg0: i32, %arg1: i32) -> (i32, i32) {
    %c0_i32 = arith.constant 0 : i32
    %c0_i32_0 = arith.constant 0 : i32
    %c0_i32_1 = arith.constant 0 : i32
    return %c0_i32, %c0_i32_0 : i32, i32
  }
  func.func @transform_8(%arg0: i32, %arg1: i32) -> (i32, i32, i32) {
    %c0_i32 = arith.constant 0 : i32
    %c0_i32_0 = arith.constant 0 : i32
    %c0_i32_1 = arith.constant 0 : i32
    %c0_i32_2 = arith.constant 0 : i32
    return %c0_i32, %c0_i32_0, %c0_i32_1 : i32, i32, i32
  }
  func.func @transform_9(%arg0: i32, %arg1: i32) -> (i32, i32) {
    %c0_i32 = arith.constant 0 : i32
    %c0_i32_0 = arith.constant 0 : i32
    %c0_i32_1 = arith.constant 0 : i32
    return %c0_i32, %c0_i32_0 : i32, i32
  }
  func.func @transform_10(%arg0: i32, %arg1: i32) -> (i32, i32, i32) {
    %c0_i32 = arith.constant 0 : i32
    %c0_i32_0 = arith.constant 0 : i32
    return %arg0, %arg1, %c0_i32 : i32, i32, i32
  }
}

</mosaic_0001>

<bundles_post_ra>
// kernel: tpu_custom_call.1
= control target key start
LH: loop header
LB: loop body
LE: loop exit
PB: predicated region body
PF: predicated region fallthrough
CT: control target
= control target key end

     0   :  { %s2277_s0 = inlined_call_operand.hbm [shape: f32[2,8,1,128], index: 0, kind: input, shape index: {}]   ;;  %s2278_s1 = inlined_call_operand.hbm [shape: f32[2,8,128], index: 1, kind: input, shape index: {}]   ;;  %s2279_s2 = inlined_call_operand.hbm [shape: f32[2,8,1,128], index: 2, kind: input, shape index: {}]   ;;  %s2280_s3 = inlined_call_operand.hbm [shape: f32[2,8,1,256], index: 3, kind: input, shape index: {}]   ;;  %s2281_s4 = inlined_call_operand.hbm [shape: f32[2,8,256], index: 4, kind: input, shape index: {}]   ;;  %s2282_s5 = inlined_call_operand.hbm [shape: f32[2,8,1,256], index: 5, kind: input, shape index: {}]   ;;  %s2283_s6 = inlined_call_operand.hbm [shape: f32[256,128], index: 6, kind: input, shape index: {}]   ;;  %s2284_s7 = inlined_call_operand.vmem [shape: f32[1,128], index: 7, kind: input, shape index: {}]   ;;  %s2285_s8 = inlined_call_operand.hbm [shape: f32[3,128,128], index: 8, kind: input, shape index: {}]   ;;  %s2286_s9 = inlined_call_operand.vmem [shape: f32[1,128], index: 9, kind: input, shape index: {}]   ;;  %s2287_s10 = inlined_call_operand.hbm [shape: f32[2,8,128], index: 10, kind: output, shape index: {}]  }
   0x1   :  { %2300 = sst [smem:[#allocation32_spill]] %s2277_s0 }
   0x2   :  { %2301 = sst [smem:[#allocation33_spill]] %s2278_s1 }
   0x3   :  { %2302 = sst [smem:[#allocation34_spill]] %s2280_s3 }
   0x4   :  { %2303 = sst [smem:[#allocation35_spill]] %s2283_s6 }
   0x5   :  { %2304 = sst [smem:[#allocation36_spill]] %s2286_s9 }
   0x6   :  { %2305 = sst [smem:[#allocation37_spill]] %s2287_s10 }
   0x7   :  { %15 = vsyncpa [#allocation4], 0 }
   0x8   :  { %17 = vsyncpa [#allocation4 + $0x1], 0 }
   0x9   :  { %18 = vsyncpa [#allocation7], 0 }
   0xa   :  { %20 = vsyncpa [#allocation7 + $0x1], 0 }
   0xb   :  { %21 = vsyncpa [#allocation10], 0 }
   0xc   :  { %23 = vsyncpa [#allocation10 + $0x1], 0 }
   0xd   :  { %24 = vsyncpa [#allocation13], 0 }
   0xe   :  { %26 = vsyncpa [#allocation13 + $0x1], 0 }
   0xf   :  { %27 = vsyncpa [#allocation16], 0 }
  0x10   :  { %28 = vsyncpa [#allocation5], 0 }
  0x11   :  { %30 = vsyncpa [#allocation5 + $0x1], 0  ;;  %s1842_s13 = smov 0   ;;  %s1844_s14 = smov 0  }
  0x12   :  { %s1846_s15 = smov 0   ;;  %s1848_s16 = smov 0  }
  0x13   :  { %s1850_s17 = smov 0   ;;  %s1852_s18 = smov 0  }
  0x14 LB: > { %2306 = sst [smem:[#allocation25_spill]] %s1760_s13  ;;  %s1873_s19 = sadd.s32 4294967295, %s1780_s18   ;;  %s1780_s18 = sphi %s1852_s18, %s36_s18   ;;  %s1776_s17 = sphi %s1850_s17, %s2335_s17   ;;  %s1772_s16 = sphi %s1848_s16, %s2334_s16   ;;  %s1768_s15 = sphi %s1846_s15, %s2333_s15   ;;  %s1764_s14 = sphi %s1844_s14, %s2337_s14   ;;  %s1760_s13 = sphi %s1842_s13, %s2336_s13  }
  0x15   : > { %2307 = sst [smem:[#allocation26_spill]] %s1768_s15  ;;  %s1296_s20 = sadd.s32 4294967294, %s1780_s18  }
  0x16   : > { %2308 = sst [smem:[#allocation27_spill]] %s1776_s17  ;;  %p78_p0 = scmp.ne.s32.totalorder %s1764_s14, %s1760_s13 }
  0x17   : > { %p79_p1 = scmp.eq.s32.totalorder %s1873_s19, 0  ;;  %p352_p2 = scmp.eq.s32.totalorder %s1873_s19, 1 }
  0x18   : > { %p358_p3 = scmp.eq.s32.totalorder %s1296_s20, 1  ;;  %p1297_p5 = scmp.ge.s32.totalorder %s1780_s18, 1 }
  0x19   : > { %p1882_p4 = por %p79_p1, %p78_p0  ;;  %p365_p7 = scmp.lt.s32.totalorder %s1780_s18, 3 }
  0x1a   : > { %p1887_p6 = por %p358_p3, %p78_p0  ;;  %s2312_s6 = sld [smem:[#allocation35_spill]] }
  0x1b   : > { %p1895_p8 = pnand %p1297_p5, %p365_p7  ;;  %s1782_s27 = smov [#allocation14]  }
  0x1c   : > { %s2310_s22 = scalar_select %p1887_p6, 1, 0 }
  0x1d   : > { %p1347_p9 = pneg %p1895_p8  ;;  %s378_s28 = sshll.u32 %s1782_s27, 4  ;;  %s379_s28 = int_to_ptr.vmem [resolvable:$true] %s378_s28 }
  0x1e   : > { %2311 = sst [smem:[#allocation28_spill]] %s2310_s22  ;;  %p1300_p11 = scmp.ge.s32.totalorder %s1780_s18, 2 }
  0x1f   : > { %p1903_p10 = pnand %p1347_p9, %p79_p1  ;;  %s2288_s30 = smov 128  }
  0x20   : > { %s376_s25 = sshll.u32 %s2312_s6, 4  ;;  %s2289_s11 = smov 8   ;;  %s377_s25 = int_to_ptr.hbm [resolvable:$true] %s376_s25 }
  0x21   : > { %1350 = dma.hbm_to_vmem [thread:$0]  (!%p1903_p10), %s377_s25, 4096, %s379_s28, [#allocation13], %s2288_s30, %s2288_s30, %s2289_s11  }
  0x22   : > { %s48_s12 = sadd.s32 1, %s1776_s17  ;;  %s65_s20 = sadd.s32 1, %s1768_s15 }
  0x23   : > { %p50_p12 = scmp.ge.s32.totalorder %s48_s12, 2  ;;  %p72_p13 = scmp.ne.s32.totalorder %s1768_s15, %s1764_s14 }
  0x24   : > { %p73_p0 = scmp.eq.s32.totalorder %s1780_s18, 0  ;;  %p1379_p7 = scmp.lt.s32.totalorder %s1780_s18, 2 }
  0x25   : > { %s2339_s12 = smov (%p50_p12, %s48_s12), 0  ;;  %p1922_p5 = por %p352_p2, %p72_p13 }
  0x26   : > { %2315 = sst [smem:[#allocation29_spill]] %s2339_s12  ;;  %p74_p3 = por %p73_p0, %p72_p13 }
  0x27   : > { %s2316_s23 = scalar_select %p1922_p5, 1, 0 }
  0x28   : > { %s60_s24 = ssub.s32 %s1776_s17, %s2339_s12  ;;  %s1930_s25 = sand.u32 1, %s1768_s15  }
  0x29   : > { %2317 = sst [smem:[#allocation30_spill]] %s2316_s23  ;;  %p63_p9 = scmp.eq.s32.totalorder %s60_s24, 0 }
  0x2a   : > { %s1933_s27 = sshll.u32 %s1776_s17, 3  ;;  %p1935_p12 = pnand %p1379_p7, %p74_p3 }
  0x2b   : > { %s1940_s30 = scalar_select %p63_p9, %s1768_s15, %s65_s20  }
  0x2c   : > { %s1943_s11 = sand.u32 1, %s1780_s18   ;;  %s1302_s24 = sshll.u32 %s1930_s25, 3 }
  0x2d   : > { %2319 = sst [smem:[#allocation31_spill]] %s1940_s30  ;;  %s439_s23 = scalar_lea.vmem [#allocation6], %s1302_s24 }
  0x2e   : > { %s2320_s1 = sld [smem:[#allocation33_spill]]  ;;  %s448_s10 = sshll.u32 %s439_s23, 4  ;;  %s449_s10 = int_to_ptr.vmem [resolvable:$true] %s448_s10 }
  0x2f   : > { %s2296_s9 = scalar_lea.sflag [#allocation7], %s1943_s11  ;;  %s2298_s20 = sshll.u32 %s1930_s25, 1 }
  0x30   : > { %s1957_s30 = sshll.u32 %s1776_s17, 4  ;;  %s2321_s3 = sld [smem:[#allocation34_spill]] }
  0x31   : > { %s482_s24 = scalar_lea.vmem [#allocation9], %s2298_s20  ;;  %s393_s17 = sshll.u32 %s2285_s8, 4  ;;  %s394_s17 = int_to_ptr.hbm [resolvable:$true] %s393_s17 }
  0x32   : > { %s496_s23 = sshll.u32 %s482_s24, 4  ;;  %s1785_s6 = smov [#allocation15]   ;;  %s497_s23 = int_to_ptr.vmem [resolvable:$true] %s496_s23 }
  0x33   : > { %s395_s12 = sshll.u32 %s1785_s6, 4  ;;  %s2323_s24 = smov 128   ;;  %s396_s12 = int_to_ptr.vmem [resolvable:$true] %s395_s12 }
  0x34   : > { %s444_s22 = scalar_lea.hbm %s2320_s1, %s1933_s27  ;;  %s2324_s0 = sld [smem:[#allocation32_spill]] }
  0x35   : > { %s446_s13 = sshll.u32 %s444_s22, 4  ;;  %s466_s29 = sadd.s32 7, %s1933_s27  ;;  %s447_s13 = int_to_ptr.hbm [resolvable:$true] %s446_s13 }
  0x36   : > { %1360 = dma.hbm_to_vmem [thread:$0]  (!%p1935_p12), %s447_s13, 128, %s449_s10, %s2296_s9  }
  0x37   : > { %s492_s22 = scalar_lea.hbm %s2321_s3, %s1957_s30  ;;  %s479_s10 = scalar_lea.sflag [#allocation10], %s1943_s11 }
  0x38   : > { %s494_s1 = sshll.u32 %s492_s22, 4  ;;  %s2322_s22 = smov 8   ;;  %s495_s1 = int_to_ptr.hbm [resolvable:$true] %s494_s1 }
  0x39   : > { %1366 = dma.hbm_to_vmem [thread:$0]  (!%p1935_p12), %s495_s1, 32, %s497_s23, %s479_s10  }
  0x3a   : > { %1353 = dma.hbm_to_vmem [thread:$0]  (!%p1903_p10), %s394_s17, 6144, %s396_s12, [#allocation16], %s2323_s24, %s2323_s24, %s2322_s22  }
  0x3b   : > { %s424_s15 = scalar_lea.hbm %s2324_s0, %s1933_s27  ;;  %s415_s9 = scalar_lea.vmem [#allocation3], %s1930_s25 }
  0x3c   : > { %s426_s1 = sshll.u32 %s424_s15, 4  ;;  %s428_s23 = sshll.u32 %s415_s9, 4  ;;  %s427_s1 = int_to_ptr.hbm [resolvable:$true] %s426_s1  ;;  %s429_s23 = int_to_ptr.vmem [resolvable:$true] %s428_s23 }
  0x3d   : > { %s413_s13 = scalar_lea.sflag [#allocation4], %s1930_s25  ;;  %s467_s3 = scalar_lea.hbm %s2279_s2, %s466_s29 }
  0x3e   : > { %1357 = dma.hbm_to_vmem [thread:$0]  (!%p1935_p12), %s427_s1, 16, %s429_s23, %s413_s13  }
  0x3f   : > { %s458_s20 = scalar_lea.vmem [#allocation8], %s1930_s25  ;;  %s469_s15 = sshll.u32 %s467_s3, 4  ;;  %s470_s15 = int_to_ptr.hbm [resolvable:$true] %s469_s15 }
  0x40   : > { %s471_s12 = sshll.u32 %s458_s20, 4  ;;  %s1307_s22 = sshll.u32 %s1930_s25, 4  ;;  %s472_s12 = int_to_ptr.vmem [resolvable:$true] %s471_s12 }
  0x41   : > { %s2325_s24 = scalar_lea.sflag [#allocation7], %s1943_s11  ;;  %s514_s27 = scalar_lea.hbm %s2281_s4, %s1957_s30 }
  0x42   : > { %1363 = dma.hbm_to_vmem [thread:$0]  (!%p1935_p12), %s470_s15, 16, %s472_s12, %s2325_s24  }
  0x43   : > { %s516_s23 = sshll.u32 %s514_s27, 4  ;;  %s507_s13 = scalar_lea.vmem [#allocation11], %s1307_s22  ;;  %s517_s23 = int_to_ptr.hbm [resolvable:$true] %s516_s23 }
  0x44   : > { %s518_s17 = sshll.u32 %s507_s13, 4  ;;  %s538_s29 = sadd.s32 14, %s1957_s30  ;;  %s519_s17 = int_to_ptr.vmem [resolvable:$true] %s518_s17 }
  0x45   : > { %1369 = dma.hbm_to_vmem [thread:$0]  (!%p1935_p12), %s517_s23, 256, %s519_s17, %s479_s10  }
  0x46   : > { %s539_s20 = scalar_lea.hbm %s2282_s5, %s538_s29  ;;  %s2326_s0 = sshll.u32 %s1930_s25, 1 }
  0x47   : > { %s529_s12 = scalar_lea.vmem [#allocation12], %s2326_s0  ;;  %s541_s24 = sshll.u32 %s539_s20, 4  ;;  %s542_s24 = int_to_ptr.hbm [resolvable:$true] %s541_s24 }
  0x48   : > { %s543_s15 = sshll.u32 %s529_s12, 4  ;;  %s526_s1 = scalar_lea.sflag [#allocation13], %s1943_s11  ;;  %s544_s15 = int_to_ptr.vmem [resolvable:$true] %s543_s15 }
  0x49   : > { %1372 = dma.hbm_to_vmem [thread:$0]  (!%p1935_p12), %s542_s24, 32, %s544_s15, %s526_s1  }
  0x4a   : > { %552 = sbr.rel (%p1895_p8) target bundleno = 434 (0x1b2), region = 60  ;;  %s2016_s10 = sand.u32 (!%p1895_p8), 1, %s1764_s14  }
  0x4b   : > { %s555_s30 = scalar_lea.sflag (!%p1895_p8), [#allocation4], %s2016_s10  ;;  %s557_s22 = scalar_lea.vmem (!%p1895_p8), [#allocation3], %s2016_s10 }
  0x4f   : > { %1731 = dma.done.wait (%p1882_p4), %s555_s30, 16  }
  0x50   : > { %1733 = vsyncadd (%p1882_p4), %s555_s30, 4294967280  ;;  %s563_s0 = sand.u32 1, %s1873_s19   ;;  %s1313_s26 = sshll.u32 %s2016_s10, 3 }
  0x51   : > { %s564_s11 = scalar_lea.sflag [#allocation7], %s563_s0  ;;  %s2028_s25 = scalar_lea.vmem [#allocation6], %s1313_s26 }
  0x52   : > { %1735 = dma.done.wait (%p1882_p4), %s564_s11, 144  }
  0x53   : > { %1737 = vsyncadd (%p1882_p4), %s564_s11, 4294967152  ;;  %s1314_s28 = sshll.u32 %s2016_s10, 1  ;;  %s576_s9 = scalar_lea.vmem [#allocation8], %s2016_s10 }
  0x54   : > { %s583_s27 = scalar_lea.sflag [#allocation10], %s563_s0  ;;  %s2036_s23 = scalar_lea.vmem [#allocation9], %s1314_s28 }
  0x55   : > { %1739 = dma.done.wait (%p1882_p4), %s583_s27, 288  }
  0x56   : > { %1741 = vsyncadd (%p1882_p4), %s583_s27, 4294967008  ;;  %s1315_s13 = sshll.u32 %s2016_s10, 4  ;;  %s603_s29 = scalar_lea.sflag [#allocation13], %s563_s0 }
  0x57   : > { %s2043_s17 = scalar_lea.vmem [#allocation11], %s1315_s13  ;;  %s2045_s6 = scalar_lea.vmem [#allocation12], %s1314_s28 }
  0x58   : > { %1743 = dma.done.wait (%p1882_p4), %s603_s29, 32  }
  0x59   : > { %1745 = vsyncadd (%p1882_p4), %s603_s29, 4294967264 }
  0x5a   : > { %1747 = dma.done.wait (%p79_p1), [#allocation13], 4096  }
  0x5b   : > { %1749 = vsyncadd (%p79_p1), [#allocation13], 4294963200 }
  0x5c   : > { %1751 = dma.done.wait (%p79_p1), [#allocation16], 6144  }
  0x5d   : > { %1753 = vsyncadd (%p79_p1), [#allocation16], 4294961152  ;;  %v2059_v0 = vld [vmem:[#allocation14 + $0x78] sm:$0xff]  ;;  %v2063_v2 = vld [vmem:[#allocation14 + $0x70] sm:$0xff]  ;;  %s1321_s12 = sshll.u32 %s1772_s16, 3  ;;  %s2327_s1 = sld [smem:[#allocation36_spill]] }
  0x5e   : > { %v2061_v1 = vld [vmem:[#allocation14 + $0xf8] sm:$0xff]  ;;  %729 = vmatpush.msra.mxu0 %v2059_v0  ;;  %v2067_v3 = vld [vmem:[#allocation14 + $0xf0] sm:$0xff]  ;;  %v2069_v4 = vld [vmem:[#allocation14 + $0x68] sm:$0xff]  ;;  %814 = vmatpush.msra.mxu2 %v2059_v0  ;;  %s2328_s0 = sld [smem:[#allocation37_spill]]  ;;  %s676_s28 = scalar_lea.vmem [#allocation17], %s1313_s26 }
  0x5f   : > { %749 = vmatpush.msra.mxu1 %v2061_v1  ;;  %v2071_v5 = vld [vmem:[#allocation14 + $0xe8] sm:$0xff]  ;;  %834 = vmatpush.msra.mxu3 %v2061_v1  ;;  %v2077_v6 = vld [vmem:[#allocation14 + $0x60] sm:$0xff]  ;;  %v2085_v8 = vld [vmem:[#allocation14 + $0x58] sm:$0xff]  ;;  %s1068_s16 = scalar_lea.sflag [#allocation5], %s2016_s10 }
  0x60   : > { %730 = vmatpush.msra.mxu0 %v2063_v2  ;;  %v2079_v7 = vld [vmem:[#allocation14 + $0xe0] sm:$0xff]  ;;  %815 = vmatpush.msra.mxu2 %v2063_v2  ;;  %v2087_v9 = vld [vmem:[#allocation14 + $0xd8] sm:$0xff]  ;;  %v2093_v10 = vld [vmem:[#allocation14 + $0x50] sm:$0xff] }
  0x61   : > { %750 = vmatpush.msra.mxu1 %v2067_v3  ;;  %835 = vmatpush.msra.mxu3 %v2067_v3  ;;  %v2095_v11 = vld [vmem:[#allocation14 + $0xd0] sm:$0xff]  ;;  %v2101_v12 = vld [vmem:[#allocation14 + $0x48] sm:$0xff]  ;;  %v2109_v14 = vld [vmem:[#allocation14 + $0x40] sm:$0xff] }
  0x62   : > { %731 = vmatpush.msra.mxu0 %v2069_v4  ;;  %816 = vmatpush.msra.mxu2 %v2069_v4  ;;  %v2103_v13 = vld [vmem:[#allocation14 + $0xc8] sm:$0xff]  ;;  %v2111_v15 = vld [vmem:[#allocation14 + $0xc0] sm:$0xff]  ;;  %v2117_v16 = vld [vmem:[#allocation14 + $0x38] sm:$0xff] }
  0x63   : > { %751 = vmatpush.msra.mxu1 %v2071_v5  ;;  %836 = vmatpush.msra.mxu3 %v2071_v5  ;;  %v2119_v17 = vld [vmem:[#allocation14 + $0xb8] sm:$0xff]  ;;  %v2125_v18 = vld [vmem:[#allocation14 + $0x30] sm:$0xff]  ;;  %v2133_v20 = vld [vmem:[#allocation14 + $0x28] sm:$0xff] }
  0x64   : > { %732 = vmatpush.msra.mxu0 %v2077_v6  ;;  %817 = vmatpush.msra.mxu2 %v2077_v6  ;;  %v2127_v19 = vld [vmem:[#allocation14 + $0xb0] sm:$0xff]  ;;  %v2135_v21 = vld [vmem:[#allocation14 + $0xa8] sm:$0xff]  ;;  %v2141_v22 = vld [vmem:[#allocation14 + $0x20] sm:$0xff]  ;;  %s1079_s11 = scalar_lea.hbm %s2328_s0, %s1321_s12 }
  0x65   : > { %752 = vmatpush.msra.mxu1 %v2079_v7  ;;  %837 = vmatpush.msra.mxu3 %v2079_v7  ;;  %v2143_v23 = vld [vmem:[#allocation14 + $0xa0] sm:$0xff]  ;;  %v2149_v24 = vld [vmem:[#allocation14 + $0x18] sm:$0xff]  ;;  %v2157_v26 = vld [vmem:[#allocation14 + $0x10] sm:$0xff]  ;;  %s1083_s27 = sshll.u32 %s1079_s11, 4  ;;  %s1084_s27 = int_to_ptr.hbm [resolvable:$true] %s1083_s27 }
  0x66   : > { %733 = vmatpush.msra.mxu0 %v2085_v8  ;;  %818 = vmatpush.msra.mxu2 %v2085_v8  ;;  %v2151_v25 = vld [vmem:[#allocation14 + $0x98] sm:$0xff]  ;;  %v2159_v27 = vld [vmem:[#allocation14 + $0x90] sm:$0xff]  ;;  %v2165_v28 = vld [vmem:[#allocation14 + $0x8] sm:$0xff] }
  0x67   : > { %753 = vmatpush.msra.mxu1 %v2087_v9  ;;  %838 = vmatpush.msra.mxu3 %v2087_v9  ;;  %v2167_v29 = vld [vmem:[#allocation14 + $0x88] sm:$0xff]  ;;  %v2173_v30 = vld [vmem:[#allocation14] sm:$0xff]  ;;  %v776_v32 = vld [vmem:[%s2036_s23] sm:$0x3]  ;;  %s1692_s23 = sshra.s32 %s1084_s27, 4  ;;  %s1693_s23 = int_to_ptr.hbm [resolvable:$true] %s1692_s23 }
  0x68   : > { %734 = vmatpush.msra.mxu0 %v2093_v10  ;;  %819 = vmatpush.msra.mxu2 %v2093_v10  ;;  %v2175_v31 = vld [vmem:[#allocation14 + $0x80] sm:$0xff]  ;;  %v810_v33 = vperm.slane %v776_v32, 0  ;;  %v811_v34 = vperm.slane %v776_v32, 1  ;;  %v979_v37 = vld [vmem:[#allocation15 + $0xf8] sm:$0xff]  ;;  %v978_v39 = vld [vmem:[#allocation15 + $0xf0] sm:$0xff]  ;;  %s1694_s13 = scalar_lea.hbm %s1693_s23, 8  ;;  %p1699_p8 = scmp.lt.s32.totalorder %s1693_s23, %s2328_s0 }
  0x69   : > { %754 = vmatpush.msra.mxu1 %v2095_v11  ;;  %839 = vmatpush.msra.mxu3 %v2095_v11  ;;  %v695_v35 = vld [vmem:[%s2043_s17] sm:$0xff]  ;;  %v696_v36 = vld [vmem:[%s2043_s17 + $0x8] sm:$0xff]  ;;  %p1695_p1 = scmp.ne.s32.totalorder %s1693_s23, %s1694_s13 }
  0x6a   : > { %735 = vmatpush.msra.mxu0 %v2101_v12  ;;  %820 = vmatpush.msra.mxu2 %v2101_v12  ;;  %v961_v38 = vld [vmem:[#allocation15 + $0x78] sm:$0xff]  ;;  %v960_v40 = vld [vmem:[#allocation15 + $0x70] sm:$0xff]  ;;  %v977_v41 = vld [vmem:[#allocation15 + $0xe8] sm:$0xff] }
  0x6b   : > { %755 = vmatpush.msra.mxu1 %v2103_v13  ;;  %840 = vmatpush.msra.mxu3 %v2103_v13  ;;  %v959_v42 = vld [vmem:[#allocation15 + $0x68] sm:$0xff]  ;;  %v976_v43 = vld [vmem:[#allocation15 + $0xe0] sm:$0xff]  ;;  %v975_v45 = vld [vmem:[#allocation15 + $0xd8] sm:$0xff]  ;;  %p1696_p2 = pnand %p1695_p1, %p1922_p5 }
  0x6c   : > { %736 = vmatpush.msra.mxu0 %v2109_v14  ;;  %821 = vmatpush.msra.mxu2 %v2109_v14  ;;  %v958_v44 = vld [vmem:[#allocation15 + $0x60] sm:$0xff]  ;;  %v957_v46 = vld [vmem:[#allocation15 + $0x58] sm:$0xff]  ;;  %v974_v47 = vld [vmem:[#allocation15 + $0xd0] sm:$0xff] }
  0x6d   : > { %756 = vmatpush.msra.mxu1 %v2111_v15  ;;  %841 = vmatpush.msra.mxu3 %v2111_v15  ;;  %v956_v48 = vld [vmem:[#allocation15 + $0x50] sm:$0xff]  ;;  %v973_v49 = vld [vmem:[#allocation15 + $0xc8] sm:$0xff]  ;;  %v972_v51 = vld [vmem:[#allocation15 + $0xc0] sm:$0xff]  ;;  %p1697_p4 = pneg %p1696_p2 }
  0x6e   : > { %737 = vmatpush.msra.mxu0 %v2117_v16  ;;  %822 = vmatpush.msra.mxu2 %v2117_v16  ;;  %v955_v50 = vld [vmem:[#allocation15 + $0x48] sm:$0xff]  ;;  %v954_v52 = vld [vmem:[#allocation15 + $0x40] sm:$0xff]  ;;  %v858_v53 = vld [vmem:[%s2045_s6] sm:$0x3]  ;;  %s1698_s6 = scalar_lea.hbm %s2328_s0, 16 }
  0x6f   : > { %757 = vmatpush.msra.mxu1 %v2119_v17  ;;  %842 = vmatpush.msra.mxu3 %v2119_v17  ;;  %v892_v54 = vperm.slane %v858_v53, 0  ;;  %v893_v55 = vperm.slane %v858_v53, 1  ;;  %v1037_v56 = vld [vmem:[#allocation15 + $0x178] sm:$0xff]  ;;  %v1036_v57 = vld [vmem:[#allocation15 + $0x170] sm:$0xff]  ;;  %v1035_v58 = vld [vmem:[#allocation15 + $0x168] sm:$0xff]  ;;  %p1700_p10 = scmp.lt.s32.totalorder %s1698_s6, %s1694_s13 }
  0x70   : > { %738 = vmatpush.msra.mxu0 %v2125_v18  ;;  %823 = vmatpush.msra.mxu2 %v2125_v18  ;;  %v971_v59 = vld [vmem:[#allocation15 + $0xb8] sm:$0xff]  ;;  %v970_v61 = vld [vmem:[#allocation15 + $0xb0] sm:$0xff]  ;;  %v1034_v63 = vld [vmem:[#allocation15 + $0x160] sm:$0xff] }
  0x71   : > { %758 = vmatpush.msra.mxu1 %v2127_v19  ;;  %843 = vmatpush.msra.mxu3 %v2127_v19  ;;  %v953_v60 = vld [vmem:[#allocation15 + $0x38] sm:$0xff]  ;;  %v952_v62 = vld [vmem:[#allocation15 + $0x30] sm:$0xff]  ;;  %p1701_p13 = por %p1700_p10, %p1699_p8 }
  0x72   : > { %739 = vmatpush.msra.mxu0 %v2133_v20  ;;  %824 = vmatpush.msra.mxu2 %v2133_v20 }
  0x73   : > { %759 = vmatpush.msra.mxu1 %v2135_v21  ;;  %844 = vmatpush.msra.mxu3 %v2135_v21  ;;  %p1702_p0 = pnand %p1701_p13, %p1697_p4 }
  0x74   : > { %740 = vmatpush.msra.mxu0 %v2141_v22  ;;  %825 = vmatpush.msra.mxu2 %v2141_v22 }
  0x75   : > { %760 = vmatpush.msra.mxu1 %v2143_v23  ;;  %845 = vmatpush.msra.mxu3 %v2143_v23 }
  0x76   : > { %741 = vmatpush.msra.mxu0 %v2149_v24  ;;  %826 = vmatpush.msra.mxu2 %v2149_v24 }
  0x77   : > { %761 = vmatpush.msra.mxu1 %v2151_v25  ;;  %846 = vmatpush.msra.mxu3 %v2151_v25 }
  0x78   : > { %742 = vmatpush.msra.mxu0 %v2157_v26  ;;  %827 = vmatpush.msra.mxu2 %v2157_v26 }
  0x79   : > { %762 = vmatpush.msra.mxu1 %v2159_v27  ;;  %847 = vmatpush.msra.mxu3 %v2159_v27 }
  0x7a   : > { %743 = vmatpush.msra.mxu0 %v2165_v28  ;;  %828 = vmatpush.msra.mxu2 %v2165_v28 }
  0x7b   : > { %763 = vmatpush.msra.mxu1 %v2167_v29  ;;  %848 = vmatpush.msra.mxu3 %v2167_v29 }
  0x7c   : > { %744 = vmatpush.msra.mxu0 %v2173_v30  ;;  %829 = vmatpush.msra.mxu2 %v2173_v30 }
  0x7d   : > { %764 = vmatpush.msra.mxu1 %v2175_v31  ;;  %849 = vmatpush.msra.mxu3 %v2175_v31 }
  0x7e   : > { %896 = vmatpush.msrb.mxu0 %v2059_v0  ;;  %830 = vmatmul.f32.vlgmr.msra.gmra.mxu2 %v810_v33  ;;  %v1033_v0 = vld [vmem:[#allocation15 + $0x158] sm:$0xff] }
  0x7f   : > { %916 = vmatpush.msrb.mxu1 %v2061_v1  ;;  %850 = vmatmul.f32.vlgmr.msra.gmra.mxu3 %v811_v34  ;;  %v969_v1 = vld [vmem:[#allocation15 + $0xa8] sm:$0xff]  ;;  %v693_v34 = vld [vmem:[%s2284_s7] sm:$0x1] }
  0x80   : > { %897 = vmatpush.msrb.mxu0 %v2063_v2  ;;  %765 = vmatmul.f32.vlgmr.msra.gmra.mxu1 %v696_v36  ;;  %v1032_v2 = vld [vmem:[#allocation15 + $0x150] sm:$0xff] }
  0x81   : > { %917 = vmatpush.msrb.mxu1 %v2067_v3  ;;  %745 = vmatmul.f32.vlgmr.msra.gmra.mxu0 %v695_v35  ;;  %v951_v3 = vld [vmem:[#allocation15 + $0x28] sm:$0xff]  ;;  %v1022_v35 = vld [vmem:[#allocation15 + $0x100] sm:$0xff] }
  0x82   : > { %898 = vmatpush.msrb.mxu0 %v2069_v4  ;;  %980 = vmatpush.msrb.mxu2 %v979_v37  ;;  %v968_v4 = vld [vmem:[#allocation15 + $0xa0] sm:$0xff] }
  0x83   : > { %918 = vmatpush.msrb.mxu1 %v2071_v5  ;;  %1000 = vmatpush.msrb.mxu3 %v961_v38  ;;  %v950_v5 = vld [vmem:[#allocation15 + $0x20] sm:$0xff]  ;;  %v1786_v38 = vmov 0.0  }
  0x84   : > { %899 = vmatpush.msrb.mxu0 %v2077_v6  ;;  %981 = vmatpush.msrb.mxu2 %v978_v39  ;;  %v1031_v6 = vld [vmem:[#allocation15 + $0x148] sm:$0xff] }
  0x85   : > { %919 = vmatpush.msrb.mxu1 %v2079_v7  ;;  %1001 = vmatpush.msrb.mxu3 %v960_v40  ;;  %v967_v7 = vld [vmem:[#allocation15 + $0x98] sm:$0xff] }
  0x86   : > { %900 = vmatpush.msrb.mxu0 %v2085_v8  ;;  %982 = vmatpush.msrb.mxu2 %v977_v41  ;;  %v949_v8 = vld [vmem:[#allocation15 + $0x18] sm:$0xff]  ;;  %v857_v41 = vld [vmem:[%s576_s9] sm:$0x1]  ;;  %s1081_s9 = sshll.u32 %s676_s28, 4  ;;  %s1082_s9 = int_to_ptr.vmem [resolvable:$true] %s1081_s9 }
  0x87   : > { %920 = vmatpush.msrb.mxu1 %v2087_v9  ;;  %1002 = vmatpush.msrb.mxu3 %v959_v42  ;;  %v1030_v9 = vld [vmem:[#allocation15 + $0x140] sm:$0xff] }
  0x88   : > { %901 = vmatpush.msrb.mxu0 %v2093_v10  ;;  %983 = vmatpush.msrb.mxu2 %v976_v43  ;;  %v966_v10 = vld [vmem:[#allocation15 + $0x90] sm:$0xff] }
  0x89   : > { %921 = vmatpush.msrb.mxu1 %v2095_v11  ;;  %1003 = vmatpush.msrb.mxu3 %v958_v44  ;;  %v948_v11 = vld [vmem:[#allocation15 + $0x10] sm:$0xff] }
  0x8a   : > { %902 = vmatpush.msrb.mxu0 %v2101_v12  ;;  %984 = vmatpush.msrb.mxu2 %v975_v45  ;;  %v965_v12 = vld [vmem:[#allocation15 + $0x88] sm:$0xff] }
  0x8b   : > { %922 = vmatpush.msrb.mxu1 %v2103_v13  ;;  %1004 = vmatpush.msrb.mxu3 %v957_v46  ;;  %v947_v13 = vld [vmem:[#allocation15 + $0x8] sm:$0xff] }
  0x8c   : > { %903 = vmatpush.msrb.mxu0 %v2109_v14  ;;  %985 = vmatpush.msrb.mxu2 %v974_v47  ;;  %v964_v14 = vld [vmem:[#allocation15 + $0x80] sm:$0xff] }
  0x8d   : > { %923 = vmatpush.msrb.mxu1 %v2111_v15  ;;  %1005 = vmatpush.msrb.mxu3 %v956_v48  ;;  %v946_v15 = vld [vmem:[#allocation15] sm:$0xff] }
  0x8e   : > { %904 = vmatpush.msrb.mxu0 %v2117_v16  ;;  %986 = vmatpush.msrb.mxu2 %v973_v49  ;;  %v1029_v16 = vld [vmem:[#allocation15 + $0x138] sm:$0xff] }
  0x8f   : > { %924 = vmatpush.msrb.mxu1 %v2119_v17  ;;  %1006 = vmatpush.msrb.mxu3 %v955_v50  ;;  %v1028_v17 = vld [vmem:[#allocation15 + $0x130] sm:$0xff] }
  0x90   : > { %905 = vmatpush.msrb.mxu0 %v2125_v18  ;;  %987 = vmatpush.msrb.mxu2 %v972_v51  ;;  %v1027_v18 = vld [vmem:[#allocation15 + $0x128] sm:$0xff]  ;;  %v1437_v50 = vld [vmem:[%s2327_s1] ss:$0 sm:$0xff] }
  0x91   : > { %925 = vmatpush.msrb.mxu1 %v2127_v19  ;;  %1007 = vmatpush.msrb.mxu3 %v954_v52 }
  0x92   : > { %906 = vmatpush.msrb.mxu0 %v2133_v20  ;;  %988 = vmatpush.msrb.mxu2 %v971_v59  ;;  %v694_v20 = vld [vmem:[%s2028_s25] sm:$0xff] }
  0x93   : > { %926 = vmatpush.msrb.mxu1 %v2135_v21  ;;  %1008 = vmatpush.msrb.mxu3 %v953_v60 }
  0x94   : > { %907 = vmatpush.msrb.mxu0 %v2141_v22  ;;  %989 = vmatpush.msrb.mxu2 %v970_v61  ;;  %v1026_v22 = vld [vmem:[#allocation15 + $0x120] sm:$0xff] }
  0x95   : > { %927 = vmatpush.msrb.mxu1 %v2143_v23  ;;  %1009 = vmatpush.msrb.mxu3 %v952_v62 }
  0x96   : > { %908 = vmatpush.msrb.mxu0 %v2149_v24  ;;  %990 = vmatpush.msrb.mxu2 %v969_v1  ;;  %v1436_v24 = vld [vmem:[%s2284_s7] ss:$0 sm:$0xff] }
  0x97   : > { %928 = vmatpush.msrb.mxu1 %v2151_v25  ;;  %1010 = vmatpush.msrb.mxu3 %v951_v3  ;;  %v1025_v25 = vld [vmem:[#allocation15 + $0x118] sm:$0xff] }
  0x98   : > { %909 = vmatpush.msrb.mxu0 %v2157_v26  ;;  %991 = vmatpush.msrb.mxu2 %v968_v4  ;;  %v1024_v26 = vld [vmem:[#allocation15 + $0x110] sm:$0xff] }
  0x99   : > { %929 = vmatpush.msrb.mxu1 %v2159_v27  ;;  %1011 = vmatpush.msrb.mxu3 %v950_v5 }
  0x9a   : > { %910 = vmatpush.msrb.mxu0 %v2165_v28  ;;  %992 = vmatpush.msrb.mxu2 %v967_v7 }
  0x9b   : > { %930 = vmatpush.msrb.mxu1 %v2167_v29  ;;  %1012 = vmatpush.msrb.mxu3 %v949_v8  ;;  %v775_v29 = vld [vmem:[%s557_s22] sm:$0x1] }
  0x9c   : > { %911 = vmatpush.msrb.mxu0 %v2173_v30  ;;  %993 = vmatpush.msrb.mxu2 %v966_v10 }
  0x9d   : > { %931 = vmatpush.msrb.mxu1 %v2175_v31  ;;  %912 = vmatmul.f32.vlgmr.msrb.gmra.mxu0 %v892_v54  ;;  %v1023_v31 = vld [vmem:[#allocation15 + $0x108] sm:$0xff] }
  0x9e   : > { %932 = vmatmul.f32.vlgmr.msrb.gmra.mxu1 %v893_v55  ;;  %1038 = vmatpush.msra.mxu0 %v1037_v56 }
  0x9f   : > { %1013 = vmatpush.msrb.mxu3 %v948_v11  ;;  %994 = vmatpush.msrb.mxu2 %v965_v12 }
  0xa0   : > { %1039 = vmatpush.msra.mxu0 %v1036_v57 }
  0xa1   : > { %1014 = vmatpush.msrb.mxu3 %v947_v13  ;;  %995 = vmatpush.msrb.mxu2 %v964_v14 }
  0xa2   : > { %1040 = vmatpush.msra.mxu0 %v1035_v58 }
  0xa3   : > { %1015 = vmatpush.msrb.mxu3 %v946_v15 }
  0xa4   : > { %1041 = vmatpush.msra.mxu0 %v1034_v63 }
  0xa6   : > { %1042 = vmatpush.msra.mxu0 %v1033_v0 }
  0xa8   : > { %1043 = vmatpush.msra.mxu0 %v1032_v2 }
  0xaa   : > { %1044 = vmatpush.msra.mxu0 %v1031_v6 }
  0xac   : > { %1045 = vmatpush.msra.mxu0 %v1030_v9 }
  0xae   : > { %1046 = vmatpush.msra.mxu0 %v1029_v16 }
  0xb0   : > { %1047 = vmatpush.msra.mxu0 %v1028_v17 }
  0xb2   : > { %1048 = vmatpush.msra.mxu0 %v1027_v18 }
  0xb4   : > { %1049 = vmatpush.msra.mxu0 %v1026_v22 }
  0xb6   : > { %1050 = vmatpush.msra.mxu0 %v1025_v25 }
  0xb8   : > { %1051 = vmatpush.msra.mxu0 %v1024_v26 }
  0xba   : > { %1052 = vmatpush.msra.mxu0 %v1023_v31 }
  0xbc   : > { %1053 = vmatpush.msra.mxu0 %v1022_v35 }
  0xfd   : > { %v766_v21 = vpop.f32.mrf.mxu1 }
  0xfe   : > { %v746_v19 = vpop.f32.mrf.mxu0 }
  0xff   : > { %v767_v23 = vadd.f32 %v766_v21, %v746_v19 }
 0x101   : > { %v769_v27 = vadd.f32 %v767_v23, %v694_v20  ;;  %v831_v28 = vpop.f32.mrf.mxu2 }
 0x102   : > { %v851_v30 = vpop.f32.mrf.mxu3 }
 0x103   : > { %v852_v32 = vadd.f32 %v851_v30, %v831_v28  ;;  %v773_v33 = vadd.f32 %v1436_v24, %v769_v27 }
 0x105   : > { %v854_v36 = vadd.f32 %v852_v32, %v775_v29  ;;  %774 = vst [vmem:[#allocation2 + $0x1] sm:$0xff] %v773_v33  ;;  %996 = vmatmul.f32.vlgmr.msrb.gmra.mxu2 %v773_v33 }
 0x107   : > { %v855_v37 = vadd.f32 %v854_v36, %v693_v34 }
 0x109   : > { %856 = vst [vmem:[#allocation2] sm:$0x1] %v855_v37 }
 0x10a   : > { %943 = vst [vmem:[#allocation2] sm:$0x1] %v1786_v38 }
 0x111   : > { %v945_v39 = vld [vmem:[#allocation2] sm:$0xff] }
 0x112   : > { %1016 = vmatmul.f32.vlgmr.msrb.gmra.mxu3 %v945_v39 }
 0x11a   : > { %v913_v40 = vpop.f32.mrf.mxu0 }
 0x11b   : > { %v933_v42 = vpop.f32.mrf.mxu1 }
 0x11c   : > { %v934_v43 = vadd.f32 %v933_v42, %v913_v40 }
 0x11e   : > { %v936_v44 = vadd.f32 %v934_v43, %v857_v41 }
 0x120   : > { %v937_v45 = vadd.f32 %v936_v44, %v693_v34 }
 0x122   : > { %938 = vst [vmem:[#allocation2 + $0x9] sm:$0x1] %v937_v45 }
 0x123   : > { %944 = vst [vmem:[#allocation2 + $0x9] sm:$0x1] %v1786_v38 }
 0x12a   : > { %v1020_v46 = vld [vmem:[#allocation2 + $0x2] sm:$0xff] }
 0x12b   : > { %1054 = vmatmul.f32.vlgmr.msra.gmra.mxu0 %v1020_v46 }
 0x188   : > { %v997_v47 = vpop.f32.mrf.mxu2 }
 0x195   : > { %v1017_v48 = vpop.f32.mrf.mxu3 }
 0x196   : > { %v1018_v49 = vadd.f32 %v1017_v48, %v997_v47 }
 0x1a8   : > { %v1055_v51 = vpop.f32.mrf.mxu0 }
 0x1a9   : > { %v1058_v52 = vadd.f32 %v1055_v51, %v1018_v49 }
 0x1ab   : > { %v1063_v53 = vadd.f32 %v1437_v50, %v1058_v52 }
 0x1ad   : > { %v1065_v54 = vadd.f32 %v1063_v53, %v694_v20 }
 0x1af   : > { %1066 = vst [vmem:[%s676_s28] sm:$0xff] %v1065_v54 }
 0x1b0   : > { %1705 = shalt.err (!%p1702_p0)
}
 0x1b1   : > { %1345 = dma.vmem_to_hbm [thread:$0]  (%p1922_p5), %s1082_s9, 128, %s1084_s27, %s1068_s16  }
 0x1b2 PF: > { %s2330_s10 = sld [smem:[#allocation25_spill]]  ;;  %p1374_p3 = pnand %p1300_p11, %p1887_p6 }
 0x1b4   : > { %p1375_p7 = pneg %p1374_p3 }
 0x1b8   : > { %s1095_s3 = sand.u32 1, %s2330_s10  }
 0x1b9   : > { %s1096_s20 = scalar_lea.sflag [#allocation5], %s1095_s3 }
 0x1ba   : > { %1755 = dma.done.wait (%p1375_p7), %s1096_s20, 128  }
 0x1bb   : > { %1757 = vsyncadd (%p1375_p7), %s1096_s20, 4294967168  ;;  %s36_s18 = sadd.s32 1, %s1780_s18   ;;  %s2332_s12 = sld [smem:[#allocation26_spill]] }
 0x1bc   : > { %p33_p9 = scmp.ge.s32.totalorder %s36_s18, 4   ;;  %s2333_s15 = sld [smem:[#allocation31_spill]] }
 0x1bd   : > { %s2334_s16 = sld [smem:[#allocation27_spill]]  ;;  %s2336_s13 = smov %s1764_s14 }
 0x1be   : > { %s2335_s17 = sld [smem:[#allocation29_spill]]  ;;  %35 = sbr.rel (!%p33_p9) target bundleno = 20 (0x14), region = 180 }
 0x1c1   : > { %s2337_s14 = smov %s2332_s12 }
 0x1c3   :  { %1102 = vsyncpa [#allocation4], 1 }
 0x1c4   :  { %1104 = vsyncpa [#allocation4 + $0x1], 1 }
 0x1c5   :  { %1105 = vsyncpa [#allocation7], 1 }
 0x1c6   :  { %1107 = vsyncpa [#allocation7 + $0x1], 1 }
 0x1c7   :  { %1108 = vsyncpa [#allocation10], 1 }
 0x1c8   :  { %1110 = vsyncpa [#allocation10 + $0x1], 1 }
 0x1c9   :  { %1111 = vsyncpa [#allocation13], 1 }
 0x1ca   :  { %1113 = vsyncpa [#allocation13 + $0x1], 1 }
 0x1cb   :  { %1114 = vsyncpa [#allocation16], 1 }
 0x1cc   :  { %1115 = vsyncpa [#allocation5], 1 }
 0x1cd   :  { %1117 = vsyncpa [#allocation5 + $0x1], 1 }

</bundles_post_ra>
